<compile_context>
chip_gen: v7x
topology: tpu7x:2x2x1
jax: 0.10.0
libtpu: 0.0.40
codegen_flags: <defaults>
</compile_context>

<pallas_src>
import functools

import jax
import jax.numpy as jnp
from jax.experimental import pallas as pl
from jax.experimental.pallas import tpu as pltpu

_TARGET_BLOCK_BYTES = 4 << 20   # ~4 MiB/block: per-step overhead <~5% even at v7x BW
_MIN_GRID_STEPS = 4             # enough steps for megacore sharding + pipelining
_VMEM_LIMIT_BYTES = 32 << 20    # in+out x double buffer of 4 MiB block = 16 MiB (<32)


def _gaussian_kernel(x_ref, o_ref, *, mu: float, neg_inv_two_sigma_sq: float):
    # Upcast to f32: free for a memory-bound kernel, keeps bf16 inputs accurate.
    x = x_ref[...].astype(jnp.float32)
    d = x - mu
    # Sign folded into the constant: sub, mul, mul (VALU) + exp (EUP).
    o_ref[...] = jnp.exp(d * d * neg_inv_two_sigma_sq).astype(o_ref.dtype)


def gaussian_kernel(x: jax.Array, mu: float = 1.0, sigma: float = 1.0) -> jax.Array:
    orig_shape = x.shape
    n = x.size
    if n == 0:
        return x

    itemsize = jnp.dtype(x.dtype).itemsize
    sub = max(8, 32 // itemsize)  # min row-tile multiple: 8 (f32), 16 (bf16), 32 (int8)

    # Lane-dense column count that divides n exactly -> reshape is a free bitcast,
    # no pad before and no slice after the pallas_call.
    cols = 0
    for c in (1024, 512, 256, 128):
        if n % c == 0:
            cols = c
            break

    if cols:
        rows = n // cols
        x2d = x.reshape(rows, cols)
        padded = False
    else:
        # Rare fallback: n not a multiple of 128. Pad the flat lane dim; XLA may
        # fuse the pad into the Pallas input DMA (allow_input_fusion below).
        cols = 128
        rows = pl.cdiv(n, cols)
        pad = rows * cols - n
        x2d = jnp.pad(x.reshape(-1), (0, pad)).reshape(rows, cols)
        padded = True

    row_bytes = cols * itemsize
    if rows <= sub:
        tile_r = rows  # single whole-array block (full-dim block shape is legal)
    else:
        cap_bytes = max(sub, (_TARGET_BLOCK_BYTES // row_bytes) // sub * sub)
        cap_grid = max(sub, (rows // _MIN_GRID_STEPS) // sub * sub)
        tile_r = min(cap_bytes, cap_grid)
    grid_r = pl.cdiv(rows, tile_r)  # partial edge block: Pallas masks OOB writes

    kernel = functools.partial(
        _gaussian_kernel,
        mu=float(mu),
        neg_inv_two_sigma_sq=-1.0 / (2.0 * float(sigma) * float(sigma)),
    )

    cost = pl.CostEstimate(
        flops=3 * rows * cols,
        transcendentals=rows * cols,
        bytes_accessed=2 * rows * cols * itemsize,
    )

    out2d = pl.pallas_call(
        kernel,
        out_shape=jax.ShapeDtypeStruct((rows, cols), x.dtype),
        grid=(grid_r,),
        in_specs=[pl.BlockSpec((tile_r, cols), lambda i: (i, 0))],
        out_specs=pl.BlockSpec((tile_r, cols), lambda i: (i, 0)),
        compiler_params=pltpu.CompilerParams(
            dimension_semantics=("parallel",),
            vmem_limit_bytes=_VMEM_LIMIT_BYTES,
            allow_input_fusion=[0] if padded else None,
        ),
        cost_estimate=cost,
    )(x2d)

    if padded:
        return out2d.reshape(-1)[:n].reshape(orig_shape)
    return out2d.reshape(orig_shape)


if __name__ == "__main__":
    key = jax.random.PRNGKey(0)
    # Small NCHW-like input consistent with typical use of this module.
    x = jax.random.normal(key, (2, 4, 16, 16), dtype=jnp.float32)

    out = gaussian_kernel(x, mu=1.0, sigma=1.0)
    out = jax.block_until_ready(out)

    # Reference check (plain JAX).
    ref = jnp.exp(-((x - 1.0) ** 2) / (2.0 * 1.0 ** 2))
    assert out.shape == x.shape and out.dtype == x.dtype
    assert jnp.allclose(out, ref, atol=1e-6, rtol=1e-6)

    print("KERNEL_OK")
</pallas_src>

<mosaic_0001>
module attributes {stable_mosaic.version = 11 : i64} {
  func.func @_gaussian_kernel(%arg0: i32, %arg1: memref<2x1024xf32, #tpu.memory_space<vmem>>, %arg2: memref<2x1024xf32, #tpu.memory_space<vmem>>) attributes {dimension_semantics = [#tpu.dimension_semantics<parallel>], iteration_bounds = array<i64: 1>, scalar_prefetch = 0 : i64, scratch_operands = 0 : i64, tpu.core_type = #tpu.core_type<tc>, window_params = [{transform_indices = @transform_0, window_bounds = array<i64: 2, 1024>}, {transform_indices = @transform_1, window_bounds = array<i64: 2, 1024>}]} {
    %c0 = arith.constant 0 : index
    %c0_0 = arith.constant 0 : index
    %0 = vector.load %arg1[%c0, %c0_0] : memref<2x1024xf32, #tpu.memory_space<vmem>>, vector<2x1024xf32>
    %cst = arith.constant 1.000000e+00 : f32
    %1 = vector.broadcast %cst : f32 to vector<2x1024xf32>
    %2 = arith.subf %0, %1 : vector<2x1024xf32>
    %3 = arith.mulf %2, %2 : vector<2x1024xf32>
    %cst_1 = arith.constant -5.000000e-01 : f32
    %4 = vector.broadcast %cst_1 : f32 to vector<2x1024xf32>
    %5 = arith.mulf %3, %4 : vector<2x1024xf32>
    %6 = math.exp %5 : vector<2x1024xf32>
    %c0_2 = arith.constant 0 : index
    %c0_3 = arith.constant 0 : index
    %7 = vector.load %arg2[%c0_2, %c0_3] : memref<2x1024xf32, #tpu.memory_space<vmem>>, vector<2x1024xf32>
    tpu.vector_store %arg2[%c0_2, %c0_3], %6 {strides = array<i32>} : memref<2x1024xf32, #tpu.memory_space<vmem>>, vector<2x1024xf32>,
    return
  }
  func.func @transform_0(%arg0: i32) -> (i32, i32) {
    %c0_i32 = arith.constant 0 : i32
    %c0_i32_0 = arith.constant 0 : i32
    return %arg0, %c0_i32 : i32, i32
  }
  func.func @transform_1(%arg0: i32) -> (i32, i32) {
    %c0_i32 = arith.constant 0 : i32
    %c0_i32_0 = arith.constant 0 : i32
    return %arg0, %c0_i32 : i32, i32
  }
}

</mosaic_0001>

<bundles_post_ra>
// kernel: tpu_custom_call.1
= control target key start
LH: loop header
LB: loop body
LE: loop exit
PB: predicated region body
PF: predicated region fallthrough
CT: control target
= control target key end

     0   :  { %6 = vsyncpa [#allocation3], 0  ;;  %s142_s0 = inlined_call_operand.hbm [shape: f32[2,1024], index: 0, kind: input, shape index: {}]   ;;  %s143_s1 = inlined_call_operand.hbm [shape: f32[2,1024], index: 1, kind: output, shape index: {}]  }
   0x1   :  { %7 = vsyncpa [#allocation4], 0  ;;  %s106_s6 = smov [#allocation2]   ;;  %s58_s10 = scalar_lea.hbm %s142_s0, 256 }
   0x2   :  { %s14_s7 = sshll.u32 %s106_s6, 4  ;;  %p59_p0 = scmp.ne.s32.totalorder %s142_s0, %s58_s10  ;;  %s15_s7 = int_to_ptr.vmem [resolvable:$true] %s14_s7 }
   0x3   :  { %p62_p1 = scmp.lt.u32.totalorder %s58_s10, %s142_s0 }
   0x5   :  { %p64_p2 = pnand %p62_p1, %p59_p0 }
   0x7   :  { %67 = shalt.err (!%p64_p2)
}
   0x8   :  { %s68_s15 = scalar_lea.vmem %s15_s7, 256  ;;  %p73_p4 = scmp.lt.s32.totalorder %s15_s7, %s15_s7 }
   0x9   :  { %p69_p3 = scmp.ne.s32.totalorder %s15_s7, %s68_s15  ;;  %p74_p5 = scmp.lt.s32.totalorder %s68_s15, %s68_s15 }
   0xb   :  { %p75_p6 = por %p74_p5, %p73_p4 }
   0xd   :  { %p76_p7 = pnand %p75_p6, %p69_p3 }
   0xf   :  { %79 = shalt.err (!%p76_p7)
}
  0x10   :  { %17 = dma.hbm_to_vmem [thread:$0]  %s142_s0, 256, %s15_s7, [#allocation3]  }
  0x11   :  { %102 = dma.done.wait [#allocation3], 256  }
  0x12   :  { %103 = vsyncadd [#allocation3], 4294967040  ;;  %v21_v0 = vld [vmem:[#allocation2] sm:$0xff]  ;;  %v22_v1 = vld [vmem:[#allocation2 + $0x8] sm:$0xff]  ;;  %s107_s18 = smov [#allocation5]  }
  0x13   :  { %v50_v2 = vadd.f32 -1.0, %v21_v0  ;;  %v51_v3 = vadd.f32 -1.0, %v22_v1  ;;  %s41_s19 = sshll.u32 %s107_s18, 4  ;;  %s42_s19 = int_to_ptr.vmem [resolvable:$true] %s41_s19 }
  0x14   :  { %s80_s0 = scalar_lea.vmem %s42_s19, 256  ;;  %p85_p9 = scmp.lt.s32.totalorder %s42_s19, %s42_s19 }
  0x15   :  { %v25_v4 = vmul.f32 %v50_v2, %v50_v2  ;;  %v26_v5 = vmul.f32 %v51_v3, %v51_v3  ;;  %p81_p8 = scmp.ne.s32.totalorder %s42_s19, %s80_s0  ;;  %p86_p10 = scmp.lt.s32.totalorder %s80_s0, %s80_s0 }
  0x17   :  { %v27_v6 = vmul.f32 -0.5, %v25_v4  ;;  %v28_v7 = vmul.f32 -0.5, %v26_v5  ;;  %p87_p11 = por %p86_p10, %p85_p9 }
  0x19   :  { %v29_v8 = vmul.f32 1.442695, %v27_v6  ;;  %v31_v9 = vmul.f32 1.442695, %v28_v7  ;;  %p88_p12 = pnand %p87_p11, %p81_p8 }
  0x1b   :  { %54 = vpow2.f32 %v29_v8 }
  0x1c   :  { %56 = vpow2.f32 %v31_v9 }
  0x25   :  { %v55_v10 = vpop.eup %54 }
  0x26   :  { %v57_v11 = vpop.eup %56  ;;  %33 = vst [vmem:[#allocation5] sm:$0xff] %v55_v10 }
  0x27   :  { %34 = vst [vmem:[#allocation5 + $0x8] sm:$0xff] %v57_v11 }
  0x28   :  { %91 = shalt.err (!%p88_p12)
}
  0x29   :  { %s92_s22 = scalar_lea.hbm %s143_s1, 256 }
  0x2a   :  { %p93_p13 = scmp.ne.s32.totalorder %s143_s1, %s92_s22  ;;  %p96_p0 = scmp.lt.u32.totalorder %s92_s22, %s143_s1 }
  0x2c   :  { %p98_p1 = pnand %p96_p0, %p93_p13 }
  0x2e   :  { %101 = shalt.err (!%p98_p1)
}
  0x2f   :  { %44 = dma.vmem_to_hbm [thread:$0]  %s42_s19, 256, %s143_s1, [#allocation4]  }
  0x30   :  { %104 = dma.done.wait [#allocation4], 256  }
  0x31   :  { %105 = vsyncadd [#allocation4], 4294967040 }
  0x32   :  { %48 = vsyncpa [#allocation3], 1 }
  0x33   :  { %49 = vsyncpa [#allocation4], 1 }

</bundles_post_ra>
